<compile_context>
chip_gen: v6e
topology: v6e:2x2x1
jax: 0.10.0
libtpu: 0.0.40
codegen_flags: <defaults>
</compile_context>

<pallas_src>
import functools

import jax
import jax.numpy as jnp
import numpy as np
from jax.experimental import pallas as pl
from jax.experimental.pallas import tpu as pltpu


def _dirichlet_kernel(params_ref, cols_ref, rows_ref, out_ref, *, inv_bh, inv_bw):
    # params_ref: (2,)            f32 SMEM   -> [left_p, right_p]
    # cols_ref:   (4, TB, H)      VMEM tile  planes [c_0, c_1, c_{W-2}, c_{W-1}]
    # rows_ref:   (2, TB, W)      VMEM tile  planes [row_0, row_{H-1}]
    # out_ref:    (num_tiles, 1)  f32 SMEM   resident; one partial per grid step
    i = pl.program_id(0)

    left_p = params_ref[0]
    right_p = params_ref[1]

    cols = cols_ref[...].astype(jnp.float32)     # (4, TB, H) -- H on lanes, TB dense on sublanes
    rows = rows_ref[...].astype(jnp.float32)     # (2, TB, W)

    # bottom: (p[:,:,1]-p[:,:,0])^2 ; top: (p[:,:,-2]-p[:,:,-1])^2
    d_bottom = cols[1] - cols[0]                               # (TB, H), full vregs
    d_top = cols[2] - cols[3]                                  # (TB, H)
    col_sum = jnp.sum(d_bottom * d_bottom + d_top * d_top)     # one unmasked reduce

    # left: (p[:,0,:]-left_p)^2 ; right: (p[:,-1,:]-right_p)^2
    d_left = rows[0] - left_p                                  # (TB, W)
    d_right = rows[1] - right_p                                # (TB, W)
    row_sum = jnp.sum(d_left * d_left + d_right * d_right)     # one unmasked reduce

    # Per-tile contribution to ((bottom+top)/(B*H) + (left+right)/(B*W)) / 4
    out_ref[i, 0] = jnp.float32(0.25) * (
        col_sum * jnp.float32(inv_bh) + row_sum * jnp.float32(inv_bw))


def dirichlet_loss_pallas(p, left_p, right_p):
    """Pallas implementation of DirichletLoss.forward(p). Returns a scalar f32."""
    B, H, W = p.shape
    itemsize = jnp.dtype(p.dtype).itemsize

    # ---- boundary-only slabs (interior of p never enters the kernel) ------
    # Two contiguous adjacent-pair lane slices instead of four 1-wide gathers.
    pair_lo = p[:, :, 0:2]                                     # (B, H, 2): [c0, c1]
    pair_hi = p[:, :, W - 2:W]                                 # (B, H, 2): [c_{W-2}, c_{W-1}]
    cols = jnp.transpose(jnp.concatenate([pair_lo, pair_hi], axis=-1), (2, 0, 1))
    # cols: (4, B, H) planes [c0, c1, c_{W-2}, c_{W-1}]
    rows = jnp.stack([p[:, 0, :], p[:, H - 1, :]], axis=0)     # (2, B, W), contiguous reads

    # ---- batch-tile sizing --------------------------------------------------
    per_batch_bytes = (4 * H + 2 * W) * itemsize
    budget = 6 * 1024 * 1024       # per-step input bytes; x2 double-buffering = 12 MiB, safe on all gens
    if B * per_batch_bytes <= budget:
        tb = B                     # single grid step: whole boundary slab, no padding needed
        b_pad = B
    else:
        tb = max(32, (budget // per_batch_bytes) // 32 * 32)   # sublane/pack aligned tile
        b_pad = ((B + tb - 1) // tb) * tb

    if b_pad > B:
        pad = b_pad - B
        # Column padding is zero -> zero difference -> zero contribution.
        cols = jnp.pad(cols, ((0, 0), (0, pad), (0, 0)))
        # Row padding equals the respective target -> (x - target)^2 == 0.
        rows_pad = jnp.stack(
            [jnp.full((pad, W), left_p, dtype=p.dtype),
             jnp.full((pad, W), right_p, dtype=p.dtype)], axis=0)
        rows = jnp.concatenate([rows, rows_pad], axis=1)

    num_tiles = b_pad // tb
    params = jnp.asarray([left_p, right_p], dtype=jnp.float32)

    kernel = functools.partial(
        _dirichlet_kernel, inv_bh=1.0 / (B * H), inv_bw=1.0 / (B * W))

    cost = pl.CostEstimate(
        flops=3 * B * (4 * H + 2 * W),
        transcendentals=0,
        bytes_accessed=B * (4 * H + 2 * W) * itemsize + 8 + 4 * num_tiles,
    )

    partials = pl.pallas_call(
        kernel,
        out_shape=jax.ShapeDtypeStruct((num_tiles, 1), jnp.float32),
        grid=(num_tiles,),
        in_specs=[
            pl.BlockSpec(memory_space=pltpu.SMEM),             # [left_p, right_p]
            pl.BlockSpec((4, tb, H), lambda i: (0, i, 0)),     # boundary columns
            pl.BlockSpec((2, tb, W), lambda i: (0, i, 0)),     # boundary rows
        ],
        # Per-tile partials live in SMEM for the whole grid; each step writes
        # a distinct element (no serialized read-modify-write chain).
        out_specs=pl.BlockSpec(memory_space=pltpu.SMEM),
        compiler_params=pltpu.CompilerParams(
            dimension_semantics=("arbitrary",),
            vmem_limit_bytes=32 * 1024 * 1024,
        ),
        cost_estimate=cost,
    )(params, cols, rows)
    return jnp.sum(partials)


def dirichlet_loss_ref(p, left_p, right_p):
    """Pure-JAX reference mirroring the PyTorch module."""
    p = p.astype(jnp.float32)
    bottom = jnp.mean((p[:, :, 1] - p[:, :, 0]) ** 2)
    top = jnp.mean((p[:, :, -2] - p[:, :, -1]) ** 2)
    left = jnp.mean((p[:, 0, :] - left_p) ** 2)
    right = jnp.mean((p[:, -1, :] - right_p) ** 2)
    return (bottom + top + left + right) / 4.0


if __name__ == "__main__":
    # Deterministic "parameters" for the module (plain scalars in __init__).
    left_p = 1.0
    right_p = 0.0

    # Small input consistent with forward(): p has shape (B, H, W).
    key = jax.random.PRNGKey(0)
    p = jax.random.normal(key, (2, 16, 16), dtype=jnp.float32)

    loss = dirichlet_loss_pallas(p, left_p, right_p)
    jax.block_until_ready(loss)

    ref = dirichlet_loss_ref(p, left_p, right_p)
    assert np.allclose(np.asarray(loss), np.asarray(ref), rtol=1e-5, atol=1e-6), (
        float(loss), float(ref))

    print("KERNEL_OK")
</pallas_src>

<mosaic_0001>
module attributes {stable_mosaic.version = 11 : i64} {
  func.func @_dirichlet_kernel(%arg0: i32, %arg1: memref<2xf32, #tpu.memory_space<smem>>, %arg2: memref<4x2x16xf32, #tpu.memory_space<vmem>>, %arg3: memref<2x2x16xf32, #tpu.memory_space<vmem>>, %arg4: memref<1x1xf32, #tpu.memory_space<smem>>) attributes {dimension_semantics = [#tpu.dimension_semantics<arbitrary>], iteration_bounds = array<i64: 1>, scalar_prefetch = 0 : i64, scratch_operands = 0 : i64, tpu.core_type = #tpu.core_type<tc>, window_params = [{transform_indices = @transform_0, window_bounds = array<i64: 2>}, {transform_indices = @transform_1, window_bounds = array<i64: 4, 2, 16>}, {transform_indices = @transform_2, window_bounds = array<i64: 2, 2, 16>}, {transform_indices = @transform_3, window_bounds = array<i64: 1, 1>}]} {
    %c0 = arith.constant 0 : index
    %0 = memref.load %arg1[%c0] : memref<2xf32, #tpu.memory_space<smem>>
    %c1 = arith.constant 1 : index
    %1 = memref.load %arg1[%c1] : memref<2xf32, #tpu.memory_space<smem>>
    %c0_0 = arith.constant 0 : index
    %c0_1 = arith.constant 0 : index
    %c0_2 = arith.constant 0 : index
    %2 = vector.load %arg2[%c0_0, %c0_1, %c0_2] : memref<4x2x16xf32, #tpu.memory_space<vmem>>, vector<4x2x16xf32>
    %c0_3 = arith.constant 0 : index
    %c0_4 = arith.constant 0 : index
    %c0_5 = arith.constant 0 : index
    %3 = vector.load %arg3[%c0_3, %c0_4, %c0_5] : memref<2x2x16xf32, #tpu.memory_space<vmem>>, vector<2x2x16xf32>
    %4 = vector.extract_strided_slice %2 {offsets = [1, 0, 0], sizes = [1, 2, 16], strides = [1, 1, 1]} : vector<4x2x16xf32> to vector<1x2x16xf32>
    %5 = vector.shape_cast %4 : vector<1x2x16xf32> to vector<2x16xf32>
    %6 = vector.extract_strided_slice %2 {offsets = [0, 0, 0], sizes = [1, 2, 16], strides = [1, 1, 1]} : vector<4x2x16xf32> to vector<1x2x16xf32>
    %7 = vector.shape_cast %6 : vector<1x2x16xf32> to vector<2x16xf32>
    %8 = arith.subf %5, %7 : vector<2x16xf32>
    %9 = vector.extract_strided_slice %2 {offsets = [2, 0, 0], sizes = [1, 2, 16], strides = [1, 1, 1]} : vector<4x2x16xf32> to vector<1x2x16xf32>
    %10 = vector.shape_cast %9 : vector<1x2x16xf32> to vector<2x16xf32>
    %11 = vector.extract_strided_slice %2 {offsets = [3, 0, 0], sizes = [1, 2, 16], strides = [1, 1, 1]} : vector<4x2x16xf32> to vector<1x2x16xf32>
    %12 = vector.shape_cast %11 : vector<1x2x16xf32> to vector<2x16xf32>
    %13 = arith.subf %10, %12 : vector<2x16xf32>
    %14 = arith.mulf %8, %8 : vector<2x16xf32>
    %15 = arith.mulf %13, %13 : vector<2x16xf32>
    %16 = arith.addf %14, %15 : vector<2x16xf32>
    %17 = vector.shape_cast %16 : vector<2x16xf32> to vector<1x2x16xf32>
    %cst = arith.constant dense<0.000000e+00> : vector<1xf32>
    %18 = vector.multi_reduction <add>, %17, %cst [1, 2] : vector<1x2x16xf32> to vector<1xf32>
    %19 = vector.shape_cast %18 : vector<1xf32> to vector<1x1x1xf32>
    %20 = vector.extract %19[0, 0, 0] : f32 from vector<1x1x1xf32>
    %21 = vector.extract_strided_slice %3 {offsets = [0, 0, 0], sizes = [1, 2, 16], strides = [1, 1, 1]} : vector<2x2x16xf32> to vector<1x2x16xf32>
    %22 = vector.shape_cast %21 : vector<1x2x16xf32> to vector<2x16xf32>
    %23 = vector.broadcast %0 : f32 to vector<2x16xf32>
    %24 = arith.subf %22, %23 : vector<2x16xf32>
    %25 = vector.extract_strided_slice %3 {offsets = [1, 0, 0], sizes = [1, 2, 16], strides = [1, 1, 1]} : vector<2x2x16xf32> to vector<1x2x16xf32>
    %26 = vector.shape_cast %25 : vector<1x2x16xf32> to vector<2x16xf32>
    %27 = vector.broadcast %1 : f32 to vector<2x16xf32>
    %28 = arith.subf %26, %27 : vector<2x16xf32>
    %29 = arith.mulf %24, %24 : vector<2x16xf32>
    %30 = arith.mulf %28, %28 : vector<2x16xf32>
    %31 = arith.addf %29, %30 : vector<2x16xf32>
    %32 = vector.shape_cast %31 : vector<2x16xf32> to vector<1x2x16xf32>
    %cst_6 = arith.constant dense<0.000000e+00> : vector<1xf32>
    %33 = vector.multi_reduction <add>, %32, %cst_6 [1, 2] : vector<1x2x16xf32> to vector<1xf32>
    %34 = vector.shape_cast %33 : vector<1xf32> to vector<1x1x1xf32>
    %35 = vector.extract %34[0, 0, 0] : f32 from vector<1x1x1xf32>
    %cst_7 = arith.constant 3.125000e-02 : f32
    %36 = arith.mulf %20, %cst_7 : f32
    %cst_8 = arith.constant 3.125000e-02 : f32
    %37 = arith.mulf %35, %cst_8 : f32
    %38 = arith.addf %36, %37 : f32
    %cst_9 = arith.constant 2.500000e-01 : f32
    %39 = arith.mulf %cst_9, %38 : f32
    %40 = arith.index_cast %arg0 : i32 to index
    %c0_10 = arith.constant 0 : index
    %41 = memref.load %arg4[%40, %c0_10] : memref<1x1xf32, #tpu.memory_space<smem>>
    memref.store %39, %arg4[%40, %c0_10] : memref<1x1xf32, #tpu.memory_space<smem>>
    return
  }
  func.func @transform_0(%arg0: i32) -> i32 {
    %c0_i32 = arith.constant 0 : i32
    %c0_i32_0 = arith.constant 0 : i32
    return %c0_i32 : i32
  }
  func.func @transform_1(%arg0: i32) -> (i32, i32, i32) {
    %c0_i32 = arith.constant 0 : i32
    %c0_i32_0 = arith.constant 0 : i32
    %c0_i32_1 = arith.constant 0 : i32
    return %c0_i32, %arg0, %c0_i32_0 : i32, i32, i32
  }
  func.func @transform_2(%arg0: i32) -> (i32, i32, i32) {
    %c0_i32 = arith.constant 0 : i32
    %c0_i32_0 = arith.constant 0 : i32
    %c0_i32_1 = arith.constant 0 : i32
    return %c0_i32, %arg0, %c0_i32_0 : i32, i32, i32
  }
  func.func @transform_3(%arg0: i32) -> (i32, i32) {
    %c0_i32 = arith.constant 0 : i32
    %c0_i32_0 = arith.constant 0 : i32
    %c0_i32_1 = arith.constant 0 : i32
    return %c0_i32, %c0_i32_0 : i32, i32
  }
}

</mosaic_0001>

<bundles_post_ra>
// kernel: tpu_custom_call.1
= control target key start
LH: loop header
LB: loop body
LE: loop exit
PB: predicated region body
PF: predicated region fallthrough
CT: control target
= control target key end

     0   :  { %8 = vsyncpa [#allocation4], 0  ;;  %s231_s0 = inlined_call_operand.hbm [shape: f32[2], index: 0, kind: input, shape index: {}]   ;;  %s232_s1 = inlined_call_operand.hbm [shape: f32[4,2,16], index: 1, kind: input, shape index: {}]   ;;  %s233_s2 = inlined_call_operand.hbm [shape: f32[2,2,16], index: 2, kind: input, shape index: {}]   ;;  %s234_s3 = inlined_call_operand.hbm [shape: f32[1,1], index: 3, kind: output, shape index: {}]  }
   0x1   :  { %9 = vsyncpa [#allocation3], 0 }
   0x2   :  { %10 = vsyncpa [#allocation8], 0 }
   0x3   :  { %11 = vsyncpa [#allocation5], 0  ;;  %s193_s12 = smov [#allocation2]   ;;  %s194_s15 = smov [#allocation6]  }
   0x4   :  { %19 = dma.hbm_to_smem %s231_s0, 16, %s193_s12, [#allocation4]  }
   0x5   :  { %s25_s16 = sshll.u32 %s194_s15, 4  ;;  %s26_s16 = int_to_ptr.vmem [resolvable:$true] %s25_s16 }
   0x6   :  { %s145_s17 = scalar_lea.vmem %s26_s16, 128  ;;  %p150_p1 = scmp.lt.s32.totalorder %s26_s16, %s26_s16 }
   0x7   :  { %p146_p0 = scmp.ne.s32.totalorder %s26_s16, %s145_s17  ;;  %p151_p2 = scmp.lt.s32.totalorder %s145_s17, %s145_s17 }
   0x9   :  { %p152_p3 = por %p151_p2, %p150_p1 }
   0xb   :  { %p153_p4 = pnand %p152_p3, %p146_p0 }
   0xd   :  { %156 = shalt.err (!%p153_p4)
}
   0xe   :  { %s195_s18 = smov 32   ;;  %s196_s19 = smov 2  }
   0xf   :  { %31 = dma.hbm_to_vmem [thread:$0]  %s232_s1, 128, %s26_s16, [#allocation3], %s195_s18, %s195_s18, %s196_s19  }
  0x10   :  { %s197_s22 = smov [#allocation7]  }
  0x11   :  { %s37_s23 = sshll.u32 %s197_s22, 4  ;;  %s38_s23 = int_to_ptr.vmem [resolvable:$true] %s37_s23 }
  0x12   :  { %s165_s0 = scalar_lea.vmem %s38_s23, 64  ;;  %p170_p6 = scmp.lt.s32.totalorder %s38_s23, %s38_s23 }
  0x13   :  { %p166_p5 = scmp.ne.s32.totalorder %s38_s23, %s165_s0  ;;  %p171_p7 = scmp.lt.s32.totalorder %s165_s0, %s165_s0 }
  0x15   :  { %p172_p8 = por %p171_p7, %p170_p6 }
  0x17   :  { %p173_p9 = pnand %p172_p8, %p166_p5 }
  0x19   :  { %176 = shalt.err (!%p173_p9)
}
  0x1a   :  { %43 = dma.hbm_to_vmem [thread:$0]  %s233_s2, 64, %s38_s23, [#allocation8], %s195_s18, %s195_s18, %s196_s19  }
  0x1b   :  { %185 = dma.done.wait [#allocation4], 16  }
  0x1c   :  { %186 = vsyncadd [#allocation4], 4294967280 }
  0x1d   :  { %187 = dma.done.wait [#allocation3], 128  }
  0x1e   :  { %188 = vsyncadd [#allocation3], 4294967168 }
  0x1f   :  { %189 = dma.done.wait [#allocation8], 64  }
  0x20   :  { %190 = vsyncadd [#allocation8], 4294967232 }
  0x21   :  { %53 = sfence }
  0x22   :  { %v56_v0 = vld [vmem:[#allocation6] sm:$0x3]  ;;  %v57_v1 = vld [vmem:[#allocation6 + $0x2] sm:$0x3]  ;;  %v58_v2 = vld [vmem:[#allocation6 + $0x4] sm:$0x3] }
  0x23   :  { %v59_v3 = vld [vmem:[#allocation6 + $0x6] sm:$0x3]  ;;  %v62_v4 = vsub.f32 %v57_v1, %v56_v0  ;;  %s54_s1 = sld [smem:[#allocation2]]  ;;  %vm67_vm0 = vcmask 123904   ;;  %v60_v8 = vld [vmem:[#allocation7] sm:$0x3] }
  0x24   :  { %v63_v5 = vsub.f32 %v58_v2, %v59_v3  ;;  %s118_s26 = sld [smem:[#allocation2 + $0x1]]  ;;  %v61_v10 = vld [vmem:[#allocation7 + $0x2] sm:$0x3]  ;;  %s198_s5 = smov [#allocation9]  }
  0x25   :  { %v64_v6 = vmul.f32 %v62_v4, %v62_v4 }
  0x26   :  { %v65_v7 = vmul.f32 %v63_v5, %v63_v5 }
  0x28   :  { %v66_v9 = vadd.f32 %v65_v7, %v64_v6 }
  0x29   :  { %v78_v11 = vstv %s54_s1 }
  0x2a   :  { %v68_v12 = vsel %vm67_vm0, %v66_v9, 0.0  ;;  %v79_v13 = vsub.f32 %v60_v8, %v78_v11  ;;  %v80_v14 = vstv %s118_s26 }
  0x2b   :  { %69 = vadd.xlane.f32.xlu0 %v68_v12  ;;  %v81_v15 = vsub.f32 %v61_v10, %v80_v14 }
  0x2c   :  { %v82_v16 = vmul.f32 %v79_v13, %v79_v13 }
  0x2d   :  { %v83_v17 = vmul.f32 %v81_v15, %v81_v15 }
  0x2f   :  { %v84_v18 = vadd.f32 %v83_v17, %v82_v16 }
  0x31   :  { %v85_v19 = vsel %vm67_vm0, %v84_v18, 0.0 }
  0x32   :  { %86 = vadd.xlane.f32.xlu0 %v85_v19 }
  0xb4   :  { %v70_v20 = vpop.xlane.xlu0 %69 }
  0xb5   :  { %v71_v21 = vrot.slane %v70_v20, 4 }
  0xb7   :  { %v72_v22 = vadd.f32 %v71_v21, %v70_v20 }
  0xb9   :  { %v73_v23 = vrot.slane %v72_v22, 2 }
  0xbb   :  { %v87_v24 = vpop.xlane.xlu0 %86  ;;  %v74_v25 = vadd.f32 %v73_v23, %v72_v22 }
  0xbc   :  { %v88_v26 = vrot.slane %v87_v24, 4 }
  0xbd   :  { %v75_v27 = vrot.slane %v74_v25, 1 }
  0xbe   :  { %v89_v28 = vadd.f32 %v88_v26, %v87_v24 }
  0xbf   :  { %v76_v29 = vadd.f32 %v75_v27, %v74_v25 }
  0xc0   :  { %v90_v30 = vrot.slane %v89_v28, 2 }
  0xc1   :  { %119 = vpush %v76_v29 }
  0xc2   :  { %v91_v31 = vadd.f32 %v90_v30, %v89_v28 }
  0xc4   :  { %v92_v32 = vrot.slane %v91_v31, 1 }
  0xc6   :  { %v93_v33 = vadd.f32 %v92_v32, %v91_v31 }
  0xc8   :  { %121 = vpush %v93_v33 }
  0xf2   :  { %s120_s2 = spop %119 }
  0xf3   :  { %s95_s27 = smul.f32 0.03125, %s120_s2 }
  0xf9   :  { %s122_s28 = spop %121 }
  0xfa   :  { %s96_s29 = smul.f32 0.03125, %s122_s28 }
  0xfc   :  { %s97_s30 = sadd.f32 %s96_s29, %s95_s27 }
  0xfe   :  { %s98_s4 = smul.f32 0.25, %s97_s30 }
 0x100   :  { %101 = sst [smem:[#allocation9]] %s98_s4 }
 0x101   :  { %109 = dma.smem_to_hbm %s198_s5, 16, %s234_s3, [#allocation5]  }
 0x102   :  { %191 = dma.done.wait [#allocation5], 16  }
 0x103   :  { %192 = vsyncadd [#allocation5], 4294967280 }
 0x104   :  { %113 = sfence }
 0x105   :  { %114 = vsyncpa [#allocation3], 1 }
 0x106   :  { %115 = vsyncpa [#allocation8], 1 }
 0x107   :  { %116 = vsyncpa [#allocation4], 1 }
 0x108   :  { %117 = vsyncpa [#allocation5], 1 }

</bundles_post_ra>
